<compile_context>
chip_gen: v5e
topology: v5e:2x2
jax: 0.10.0
libtpu: 0.0.40
codegen_flags: <defaults>
</compile_context>

<pallas_src>
import functools

import jax
import jax.numpy as jnp
import numpy as np
from jax.experimental import pallas as pl
from jax.experimental.pallas import tpu as pltpu

KS = 3                       # conv kernel size of half_res
NEG_SLOPE = 0.2              # LeakyReLU negative_slope


def half_res_kernel(wb_ref, b_ref, m_ref, x_ref, o_ref, *, W, compute_dtype):
    """One grid step = Nb batch elements, channels stacked along sublanes.

    wb_ref : VMEM (9, Nb*C, Nb*C)      BN-folded per-tap weights, block-diag over Nb
    b_ref  : VMEM (Nb*C, 1)  f32       BN-folded bias (tiled over Nb)
    m_ref  : VMEM (9, H*W)   f32       per-tap validity mask (0/1) over flattened H*W
    x_ref  : VMEM (Nb*C, H*W) f32      input rows for the Nb images
    o_ref  : VMEM (Nb*C, H*W) f32      output rows
    """
    xv = x_ref[...]                                        # (R, L) f32, R = Nb*C
    R, L = xv.shape

    # Conv + folded BN: bias-initialized f32 accumulator, one MXU matmul per tap.
    acc = jnp.broadcast_to(b_ref[...], (R, L))
    for t in range(KS * KS):
        dh, dw = t // KS - 1, t % KS - 1
        off = dh * W + dw                                  # lane offset of this tap
        if off == 0:                                       # center tap: identity, mask all-ones
            win = xv
        else:
            # Circular lane roll; the mask zeroes wrapped / cross-row lanes.
            win = pltpu.roll(xv, shift=(-off) % L, axis=1) * m_ref[t:t + 1, :]
        acc = acc + jnp.dot(wb_ref[t].astype(compute_dtype),
                            win.astype(compute_dtype),
                            preferred_element_type=jnp.float32)

    # LeakyReLU(0.2) and residual add, all lane-dense, single unmasked store.
    y = jnp.maximum(acc, NEG_SLOPE * acc)
    o_ref[...] = (y + xv).astype(o_ref.dtype)


def _pick_batch_block(n, c):
    """Smallest Nb dividing n such that the block's Nb*c rows tile the 8 f32 sublanes."""
    if c % 8 == 0:
        return 1
    for nb in range(1, n):
        if n % nb == 0 and (nb * c) % 8 == 0:
            return nb
    return n


def half_res_forward(x, conv_w, gamma, beta, run_mean, run_var, eps=1e-5,
                     compute_dtype=jnp.float32):
    """x: (N, C, H, W) f32; conv_w: (C, C, 3, 3); BN params: shape (C,).

    compute_dtype=jnp.bfloat16 enables the fast MXU path on v6e/v7x (f32
    accumulate kept); default f32 preserves reference-level numerics.
    """
    N, C, H, W = x.shape
    c_out, c_in, kh_, kw_ = conv_w.shape
    assert c_in == C and c_out == C and kh_ == KS and kw_ == KS, \
        "half_res residual requires ch_in == ch_out and a 3x3 kernel"
    L = H * W
    Nb = _pick_batch_block(N, C)

    # Fold BN (eval mode) into the conv weights and a per-channel bias.
    scale = gamma.astype(jnp.float32) / jnp.sqrt(run_var.astype(jnp.float32) + eps)
    w_folded = conv_w.astype(jnp.float32) * scale[:, None, None, None]      # (Co, Ci, 3, 3)
    w_taps = jnp.transpose(w_folded, (2, 3, 0, 1)).reshape(KS * KS, C, C)   # (9, Co, Ci)

    # Replicate each tap block-diagonally over the Nb images packed along sublanes:
    # Wb[t][n*C + co, n*C + ci] = w_taps[t][co, ci].
    eye_nb = jnp.eye(Nb, dtype=jnp.float32)
    wb = jnp.einsum('nm,tij->tnimj', eye_nb, w_taps).reshape(KS * KS, Nb * C, Nb * C)
    wb = wb.astype(compute_dtype)

    bias = (beta.astype(jnp.float32) - run_mean.astype(jnp.float32) * scale)  # (C,)
    bias = jnp.tile(bias, Nb).reshape(Nb * C, 1)

    # Static per-tap validity masks over the flattened H*W lane axis.
    masks_np = np.zeros((KS * KS, L), np.float32)
    hh = np.arange(H)[:, None]
    ww = np.arange(W)[None, :]
    for t in range(KS * KS):
        dh, dw = t // KS - 1, t % KS - 1
        valid = (hh + dh >= 0) & (hh + dh < H) & (ww + dw >= 0) & (ww + dw < W)
        masks_np[t] = valid.reshape(-1)
    masks = jnp.asarray(masks_np)

    # Lane-dense layout: (N, C, H, W) -> (N*C, H*W) is a free metadata reshape.
    x_flat = x.astype(jnp.float32).reshape(N * C, L)

    kernel = functools.partial(half_res_kernel, W=W, compute_dtype=compute_dtype)
    out_flat = pl.pallas_call(
        kernel,
        out_shape=jax.ShapeDtypeStruct((N * C, L), jnp.float32),
        grid=(N // Nb,),
        in_specs=[
            pl.BlockSpec((KS * KS, Nb * C, Nb * C), lambda i: (0, 0, 0)),  # folded weights
            pl.BlockSpec((Nb * C, 1), lambda i: (0, 0)),                   # folded bias
            pl.BlockSpec((KS * KS, L), lambda i: (0, 0)),                  # tap masks
            pl.BlockSpec((Nb * C, L), lambda i: (i, 0)),                   # x (lane-dense)
        ],
        out_specs=pl.BlockSpec((Nb * C, L), lambda i: (i, 0)),
        compiler_params=pltpu.CompilerParams(
            dimension_semantics=("parallel",)),
    )(wb, bias, masks, x_flat)

    return out_flat.reshape(N, C, H, W)


def half_res_reference(x, conv_w, gamma, beta, run_mean, run_var, eps=1e-5):
    """Pure-JAX reference matching the PyTorch forward (BN in eval mode)."""
    c = jax.lax.conv_general_dilated(
        x, conv_w, window_strides=(1, 1), padding=[(1, 1), (1, 1)],
        dimension_numbers=("NCHW", "OIHW", "NCHW"),
        precision=jax.lax.Precision.HIGHEST)
    g = gamma.reshape(1, -1, 1, 1)
    b = beta.reshape(1, -1, 1, 1)
    m = run_mean.reshape(1, -1, 1, 1)
    v = run_var.reshape(1, -1, 1, 1)
    c = (c - m) / jnp.sqrt(v + eps) * g + b
    c = jnp.where(c >= 0, c, NEG_SLOPE * c)
    return c + x


if __name__ == "__main__":
    key = jax.random.PRNGKey(0)
    k_x, k_w, k_g, k_b, k_m, k_v = jax.random.split(key, 6)

    N, C, H, W = 2, 4, 16, 16
    x = jax.random.normal(k_x, (N, C, H, W), dtype=jnp.float32)

    # Conv2d(C, C, kernel_size=3, bias=False) -> weight (C, C, 3, 3)
    conv_w = jax.random.normal(k_w, (C, C, 3, 3), dtype=jnp.float32) * 0.1
    # BatchNorm2d(C): gamma, beta, running_mean, running_var each (C,)
    gamma = 1.0 + 0.1 * jax.random.normal(k_g, (C,), dtype=jnp.float32)
    beta = 0.1 * jax.random.normal(k_b, (C,), dtype=jnp.float32)
    run_mean = 0.05 * jax.random.normal(k_m, (C,), dtype=jnp.float32)
    run_var = 0.5 + jax.random.uniform(k_v, (C,), dtype=jnp.float32)

    fwd = jax.jit(half_res_forward)
    out = fwd(x, conv_w, gamma, beta, run_mean, run_var)
    out = jax.block_until_ready(out)

    ref = half_res_reference(x, conv_w, gamma, beta, run_mean, run_var)
    np.testing.assert_allclose(np.asarray(out), np.asarray(ref),
                               rtol=1e-4, atol=1e-4)

    print("KERNEL_OK")
</pallas_src>

<mosaic_0001>
module attributes {stable_mosaic.version = 11 : i64} {
  func.func @half_res_kernel(%arg0: i32, %arg1: memref<9x8x8xf32, #tpu.memory_space<vmem>>, %arg2: memref<8x1xf32, #tpu.memory_space<vmem>>, %arg3: memref<9x256xf32, #tpu.memory_space<vmem>>, %arg4: memref<8x256xf32, #tpu.memory_space<vmem>>, %arg5: memref<8x256xf32, #tpu.memory_space<vmem>>) attributes {dimension_semantics = [#tpu.dimension_semantics<parallel>], iteration_bounds = array<i64: 1>, scalar_prefetch = 0 : i64, scratch_operands = 0 : i64, tpu.core_type = #tpu.core_type<tc>, window_params = [{pipeline_mode = #tpu.pipeline_mode<synchronous>, transform_indices = @transform_0, window_bounds = array<i64: 9, 8, 8>}, {pipeline_mode = #tpu.pipeline_mode<synchronous>, transform_indices = @transform_1, window_bounds = array<i64: 8, 1>}, {pipeline_mode = #tpu.pipeline_mode<synchronous>, transform_indices = @transform_2, window_bounds = array<i64: 9, 256>}, {transform_indices = @transform_3, window_bounds = array<i64: 8, 256>}, {transform_indices = @transform_4, window_bounds = array<i64: 8, 256>}]} {
    %c0 = arith.constant 0 : index
    %c0_0 = arith.constant 0 : index
    %0 = vector.load %arg4[%c0, %c0_0] : memref<8x256xf32, #tpu.memory_space<vmem>>, vector<8x256xf32>
    %c0_1 = arith.constant 0 : index
    %c0_2 = arith.constant 0 : index
    %1 = vector.load %arg2[%c0_1, %c0_2] : memref<8x1xf32, #tpu.memory_space<vmem>>, vector<8x1xf32>
    %2 = vector.shape_cast %1 : vector<8x1xf32> to vector<8x1xf32>
    %3 = vector.broadcast %2 : vector<8x1xf32> to vector<8x256xf32>
    %c17_i32 = arith.constant 17 : i32
    %4 = tpu.dynamic_rotate %0 by %c17_i32 dim 1 : vector<8x256xf32>, i32 -> vector<8x256xf32>
    %c0_3 = arith.constant 0 : index
    %c0_4 = arith.constant 0 : index
    %5 = vector.load %arg3[%c0_3, %c0_4] : memref<9x256xf32, #tpu.memory_space<vmem>>, vector<1x256xf32>
    %6 = vector.broadcast %5 : vector<1x256xf32> to vector<8x256xf32>
    %7 = arith.mulf %4, %6 : vector<8x256xf32>
    %c0_5 = arith.constant 0 : index
    %c0_6 = arith.constant 0 : index
    %c0_7 = arith.constant 0 : index
    %8 = vector.load %arg1[%c0_5, %c0_6, %c0_7] : memref<9x8x8xf32, #tpu.memory_space<vmem>>, vector<1x8x8xf32>
    %9 = vector.shape_cast %8 : vector<1x8x8xf32> to vector<8x8xf32>
    %cst = arith.constant dense<0.000000e+00> : vector<8x256xf32>
    %10 = tpu.matmul %9, %7, %cst {dimension_numbers = #tpu.dot_dimension_numbers<[1], [0], [0], [1], [0, 0, 1, 1], [], []>} : vector<8x8xf32>, vector<8x256xf32>, vector<8x256xf32> -> vector<8x256xf32>
    %11 = arith.addf %3, %10 : vector<8x256xf32>
    %c16_i32 = arith.constant 16 : i32
    %12 = tpu.dynamic_rotate %0 by %c16_i32 dim 1 : vector<8x256xf32>, i32 -> vector<8x256xf32>
    %c1 = arith.constant 1 : index
    %c0_8 = arith.constant 0 : index
    %13 = vector.load %arg3[%c1, %c0_8] : memref<9x256xf32, #tpu.memory_space<vmem>>, vector<1x256xf32>
    %14 = vector.broadcast %13 : vector<1x256xf32> to vector<8x256xf32>
    %15 = arith.mulf %12, %14 : vector<8x256xf32>
    %c1_9 = arith.constant 1 : index
    %c0_10 = arith.constant 0 : index
    %c0_11 = arith.constant 0 : index
    %16 = vector.load %arg1[%c1_9, %c0_10, %c0_11] : memref<9x8x8xf32, #tpu.memory_space<vmem>>, vector<1x8x8xf32>
    %17 = vector.shape_cast %16 : vector<1x8x8xf32> to vector<8x8xf32>
    %cst_12 = arith.constant dense<0.000000e+00> : vector<8x256xf32>
    %18 = tpu.matmul %17, %15, %cst_12 {dimension_numbers = #tpu.dot_dimension_numbers<[1], [0], [0], [1], [0, 0, 1, 1], [], []>} : vector<8x8xf32>, vector<8x256xf32>, vector<8x256xf32> -> vector<8x256xf32>
    %19 = arith.addf %11, %18 : vector<8x256xf32>
    %c15_i32 = arith.constant 15 : i32
    %20 = tpu.dynamic_rotate %0 by %c15_i32 dim 1 : vector<8x256xf32>, i32 -> vector<8x256xf32>
    %c2 = arith.constant 2 : index
    %c0_13 = arith.constant 0 : index
    %21 = vector.load %arg3[%c2, %c0_13] : memref<9x256xf32, #tpu.memory_space<vmem>>, vector<1x256xf32>
    %22 = vector.broadcast %21 : vector<1x256xf32> to vector<8x256xf32>
    %23 = arith.mulf %20, %22 : vector<8x256xf32>
    %c2_14 = arith.constant 2 : index
    %c0_15 = arith.constant 0 : index
    %c0_16 = arith.constant 0 : index
    %24 = vector.load %arg1[%c2_14, %c0_15, %c0_16] : memref<9x8x8xf32, #tpu.memory_space<vmem>>, vector<1x8x8xf32>
    %25 = vector.shape_cast %24 : vector<1x8x8xf32> to vector<8x8xf32>
    %cst_17 = arith.constant dense<0.000000e+00> : vector<8x256xf32>
    %26 = tpu.matmul %25, %23, %cst_17 {dimension_numbers = #tpu.dot_dimension_numbers<[1], [0], [0], [1], [0, 0, 1, 1], [], []>} : vector<8x8xf32>, vector<8x256xf32>, vector<8x256xf32> -> vector<8x256xf32>
    %27 = arith.addf %19, %26 : vector<8x256xf32>
    %c1_i32 = arith.constant 1 : i32
    %28 = tpu.dynamic_rotate %0 by %c1_i32 dim 1 : vector<8x256xf32>, i32 -> vector<8x256xf32>
    %c3 = arith.constant 3 : index
    %c0_18 = arith.constant 0 : index
    %29 = vector.load %arg3[%c3, %c0_18] : memref<9x256xf32, #tpu.memory_space<vmem>>, vector<1x256xf32>
    %30 = vector.broadcast %29 : vector<1x256xf32> to vector<8x256xf32>
    %31 = arith.mulf %28, %30 : vector<8x256xf32>
    %c3_19 = arith.constant 3 : index
    %c0_20 = arith.constant 0 : index
    %c0_21 = arith.constant 0 : index
    %32 = vector.load %arg1[%c3_19, %c0_20, %c0_21] : memref<9x8x8xf32, #tpu.memory_space<vmem>>, vector<1x8x8xf32>
    %33 = vector.shape_cast %32 : vector<1x8x8xf32> to vector<8x8xf32>
    %cst_22 = arith.constant dense<0.000000e+00> : vector<8x256xf32>
    %34 = tpu.matmul %33, %31, %cst_22 {dimension_numbers = #tpu.dot_dimension_numbers<[1], [0], [0], [1], [0, 0, 1, 1], [], []>} : vector<8x8xf32>, vector<8x256xf32>, vector<8x256xf32> -> vector<8x256xf32>
    %35 = arith.addf %27, %34 : vector<8x256xf32>
    %c4 = arith.constant 4 : index
    %c0_23 = arith.constant 0 : index
    %c0_24 = arith.constant 0 : index
    %36 = vector.load %arg1[%c4, %c0_23, %c0_24] : memref<9x8x8xf32, #tpu.memory_space<vmem>>, vector<1x8x8xf32>
    %37 = vector.shape_cast %36 : vector<1x8x8xf32> to vector<8x8xf32>
    %cst_25 = arith.constant dense<0.000000e+00> : vector<8x256xf32>
    %38 = tpu.matmul %37, %0, %cst_25 {dimension_numbers = #tpu.dot_dimension_numbers<[1], [0], [0], [1], [0, 0, 1, 1], [], []>} : vector<8x8xf32>, vector<8x256xf32>, vector<8x256xf32> -> vector<8x256xf32>
    %39 = arith.addf %35, %38 : vector<8x256xf32>
    %c255_i32 = arith.constant 255 : i32
    %40 = tpu.dynamic_rotate %0 by %c255_i32 dim 1 : vector<8x256xf32>, i32 -> vector<8x256xf32>
    %c5 = arith.constant 5 : index
    %c0_26 = arith.constant 0 : index
    %41 = vector.load %arg3[%c5, %c0_26] : memref<9x256xf32, #tpu.memory_space<vmem>>, vector<1x256xf32>
    %42 = vector.broadcast %41 : vector<1x256xf32> to vector<8x256xf32>
    %43 = arith.mulf %40, %42 : vector<8x256xf32>
    %c5_27 = arith.constant 5 : index
    %c0_28 = arith.constant 0 : index
    %c0_29 = arith.constant 0 : index
    %44 = vector.load %arg1[%c5_27, %c0_28, %c0_29] : memref<9x8x8xf32, #tpu.memory_space<vmem>>, vector<1x8x8xf32>
    %45 = vector.shape_cast %44 : vector<1x8x8xf32> to vector<8x8xf32>
    %cst_30 = arith.constant dense<0.000000e+00> : vector<8x256xf32>
    %46 = tpu.matmul %45, %43, %cst_30 {dimension_numbers = #tpu.dot_dimension_numbers<[1], [0], [0], [1], [0, 0, 1, 1], [], []>} : vector<8x8xf32>, vector<8x256xf32>, vector<8x256xf32> -> vector<8x256xf32>
    %47 = arith.addf %39, %46 : vector<8x256xf32>
    %c241_i32 = arith.constant 241 : i32
    %48 = tpu.dynamic_rotate %0 by %c241_i32 dim 1 : vector<8x256xf32>, i32 -> vector<8x256xf32>
    %c6 = arith.constant 6 : index
    %c0_31 = arith.constant 0 : index
    %49 = vector.load %arg3[%c6, %c0_31] : memref<9x256xf32, #tpu.memory_space<vmem>>, vector<1x256xf32>
    %50 = vector.broadcast %49 : vector<1x256xf32> to vector<8x256xf32>
    %51 = arith.mulf %48, %50 : vector<8x256xf32>
    %c6_32 = arith.constant 6 : index
    %c0_33 = arith.constant 0 : index
    %c0_34 = arith.constant 0 : index
    %52 = vector.load %arg1[%c6_32, %c0_33, %c0_34] : memref<9x8x8xf32, #tpu.memory_space<vmem>>, vector<1x8x8xf32>
    %53 = vector.shape_cast %52 : vector<1x8x8xf32> to vector<8x8xf32>
    %cst_35 = arith.constant dense<0.000000e+00> : vector<8x256xf32>
    %54 = tpu.matmul %53, %51, %cst_35 {dimension_numbers = #tpu.dot_dimension_numbers<[1], [0], [0], [1], [0, 0, 1, 1], [], []>} : vector<8x8xf32>, vector<8x256xf32>, vector<8x256xf32> -> vector<8x256xf32>
    %55 = arith.addf %47, %54 : vector<8x256xf32>
    %c240_i32 = arith.constant 240 : i32
    %56 = tpu.dynamic_rotate %0 by %c240_i32 dim 1 : vector<8x256xf32>, i32 -> vector<8x256xf32>
    %c7 = arith.constant 7 : index
    %c0_36 = arith.constant 0 : index
    %57 = vector.load %arg3[%c7, %c0_36] : memref<9x256xf32, #tpu.memory_space<vmem>>, vector<1x256xf32>
    %58 = vector.broadcast %57 : vector<1x256xf32> to vector<8x256xf32>
    %59 = arith.mulf %56, %58 : vector<8x256xf32>
    %c7_37 = arith.constant 7 : index
    %c0_38 = arith.constant 0 : index
    %c0_39 = arith.constant 0 : index
    %60 = vector.load %arg1[%c7_37, %c0_38, %c0_39] : memref<9x8x8xf32, #tpu.memory_space<vmem>>, vector<1x8x8xf32>
    %61 = vector.shape_cast %60 : vector<1x8x8xf32> to vector<8x8xf32>
    %cst_40 = arith.constant dense<0.000000e+00> : vector<8x256xf32>
    %62 = tpu.matmul %61, %59, %cst_40 {dimension_numbers = #tpu.dot_dimension_numbers<[1], [0], [0], [1], [0, 0, 1, 1], [], []>} : vector<8x8xf32>, vector<8x256xf32>, vector<8x256xf32> -> vector<8x256xf32>
    %63 = arith.addf %55, %62 : vector<8x256xf32>
    %c239_i32 = arith.constant 239 : i32
    %64 = tpu.dynamic_rotate %0 by %c239_i32 dim 1 : vector<8x256xf32>, i32 -> vector<8x256xf32>
    %c8 = arith.constant 8 : index
    %c0_41 = arith.constant 0 : index
    %65 = vector.load %arg3[%c8, %c0_41] : memref<9x256xf32, #tpu.memory_space<vmem>>, vector<1x256xf32>
    %66 = vector.broadcast %65 : vector<1x256xf32> to vector<8x256xf32>
    %67 = arith.mulf %64, %66 : vector<8x256xf32>
    %c8_42 = arith.constant 8 : index
    %c0_43 = arith.constant 0 : index
    %c0_44 = arith.constant 0 : index
    %68 = vector.load %arg1[%c8_42, %c0_43, %c0_44] : memref<9x8x8xf32, #tpu.memory_space<vmem>>, vector<1x8x8xf32>
    %69 = vector.shape_cast %68 : vector<1x8x8xf32> to vector<8x8xf32>
    %cst_45 = arith.constant dense<0.000000e+00> : vector<8x256xf32>
    %70 = tpu.matmul %69, %67, %cst_45 {dimension_numbers = #tpu.dot_dimension_numbers<[1], [0], [0], [1], [0, 0, 1, 1], [], []>} : vector<8x8xf32>, vector<8x256xf32>, vector<8x256xf32> -> vector<8x256xf32>
    %71 = arith.addf %63, %70 : vector<8x256xf32>
    %cst_46 = arith.constant 2.000000e-01 : f32
    %72 = vector.broadcast %cst_46 : f32 to vector<8x256xf32>
    %73 = arith.mulf %72, %71 : vector<8x256xf32>
    %74 = arith.maximumf %71, %73 : vector<8x256xf32>
    %75 = arith.addf %74, %0 : vector<8x256xf32>
    %c0_47 = arith.constant 0 : index
    %c0_48 = arith.constant 0 : index
    %76 = vector.load %arg5[%c0_47, %c0_48] : memref<8x256xf32, #tpu.memory_space<vmem>>, vector<8x256xf32>
    tpu.vector_store %arg5[%c0_47, %c0_48], %75 {strides = array<i32>} : memref<8x256xf32, #tpu.memory_space<vmem>>, vector<8x256xf32>,
    return
  }
  func.func @transform_0(%arg0: i32) -> (i32, i32, i32) {
    %c0_i32 = arith.constant 0 : i32
    %c0_i32_0 = arith.constant 0 : i32
    %c0_i32_1 = arith.constant 0 : i32
    %c0_i32_2 = arith.constant 0 : i32
    return %c0_i32, %c0_i32_0, %c0_i32_1 : i32, i32, i32
  }
  func.func @transform_1(%arg0: i32) -> (i32, i32) {
    %c0_i32 = arith.constant 0 : i32
    %c0_i32_0 = arith.constant 0 : i32
    %c0_i32_1 = arith.constant 0 : i32
    return %c0_i32, %c0_i32_0 : i32, i32
  }
  func.func @transform_2(%arg0: i32) -> (i32, i32) {
    %c0_i32 = arith.constant 0 : i32
    %c0_i32_0 = arith.constant 0 : i32
    %c0_i32_1 = arith.constant 0 : i32
    return %c0_i32, %c0_i32_0 : i32, i32
  }
  func.func @transform_3(%arg0: i32) -> (i32, i32) {
    %c0_i32 = arith.constant 0 : i32
    %c0_i32_0 = arith.constant 0 : i32
    return %arg0, %c0_i32 : i32, i32
  }
  func.func @transform_4(%arg0: i32) -> (i32, i32) {
    %c0_i32 = arith.constant 0 : i32
    %c0_i32_0 = arith.constant 0 : i32
    return %arg0, %c0_i32 : i32, i32
  }
}

</mosaic_0001>

<bundles_post_ra>
// kernel: tile.8
= control target key start
LH: loop header
LB: loop body
LE: loop exit
PB: predicated region body
PF: predicated region fallthrough
CT: control target
= control target key end

     0   :  { %s22_s0 = inlined_call_operand.vmem [shape: f32[4], index: 0, kind: input, shape index: {}]   ;;  %s23_s1 = inlined_call_operand.vmem [shape: f32[2,4], index: 1, kind: output, shape index: {}]  }
   0x1   :  { %v4_v0 = vld [vmem:[%s22_s0] ss:$0 sm:$0xff] }
   0x2   :  { %5 = vst [vmem:[%s23_s1] sm:$0x3] %v4_v0 }

// kernel: tile.0
= control target key start
LH: loop header
LB: loop body
LE: loop exit
PB: predicated region body
PF: predicated region fallthrough
CT: control target
= control target key end

     0   :  { %s34_s8 = smov 125   ;;  %s35_s9 = smov 126   ;;  %vm7_vm0 = vcmask 7168   ;;  %s61_s0 = inlined_call_operand.vmem [shape: f32[2,4], index: 0, kind: input, shape index: {}]   ;;  %s62_s1 = inlined_call_operand.vmem [shape: f32[8,1], index: 1, kind: output, shape index: {}]  }
   0x1   :  { %v4_v0 = vld [vmem:[%s61_s0] sm:$0x3]  ;;  %s33_s0 = smov 127  }
   0x2   :  { %5 = vst [vmem:[#allocation0] sm:$0x3] %v4_v0 }
   0x9   :  { %v9_v1 = vld [vmem:[#allocation0] sm:$0x3]  }
   0xa   :  { %v21_v2 = vld [vmem:[#allocation0] sm:$0x3]   ;;  %10 = vrot.lane.b32.xlu0 %v9_v1, %s33_s0 }
   0xb   :  { %22 = vrot.lane.b32.xlu1 %v21_v2, %s34_s8  ;;  %v15_v3 = vld [vmem:[#allocation0] sm:$0x3]  }
   0xc   :  { %v6_v4 = vld [vmem:[#allocation0] sm:$0x3]  }
   0xd   :  { %8 = vst.msk [vmem:[%s62_s1] ss:$4 sm:$0x3] %vm7_vm0, %v6_v4  }
  0x12   :  { %16 = vrot.lane.b32.xlu0 %v15_v3, %s35_s9 }
  0x7c   :  { %v11_v5 = vpop.permute.xlu0 %10  }
  0x7d   :  { %v23_v6 = vpop.permute.xlu1 %22   ;;  %27 = vst.msk [vmem:[%s62_s1 + $0x1] ss:$4 sm:$0x3] %vm7_vm0, %v11_v5  }
  0x7e   :  { %29 = vst.msk [vmem:[%s62_s1 + $0x3] ss:$4 sm:$0x3] %vm7_vm0, %v23_v6  }
  0x84   :  { %v17_v7 = vpop.permute.xlu0 %16  }
  0x85   :  { %28 = vst.msk [vmem:[%s62_s1 + $0x2] ss:$4 sm:$0x3] %vm7_vm0, %v17_v7  }

// kernel: half_res_forward.1
= control target key start
LH: loop header
LB: loop body
LE: loop exit
PB: predicated region body
PF: predicated region fallthrough
CT: control target
= control target key end

     0   :  { %s633_s17 = smov 16   ;;  %s634_s18 = smov 17   ;;  %v641_v3 = vmov 0   ;;  %v29_v5 = vlaneseq  ;;  %vm43_vm3 = vcmask 64512   ;;  %s785_s3 = inlined_call_operand.vmem [shape: f32[8,256], index: 3, kind: input, shape index: {}]   ;;  %s786_s1 = inlined_call_operand.vmem [shape: f32[8,1], index: 1, kind: input, shape index: {}]   ;;  %s787_s2 = inlined_call_operand.vmem [shape: f32[9,256], index: 2, kind: input, shape index: {}]   ;;  %s788_s0 = inlined_call_operand.vmem [shape: f32[9,8,8], index: 0, kind: input, shape index: {}]   ;;  %s789_s4 = inlined_call_operand.vmem [shape: f32[8,256], index: 4, kind: output, shape index: {}]  }
   0x1   :  { %v670_v0 = vld [vmem:[%s785_s3] sm:$0xff]  ;;  %s635_s19 = smov 15   ;;  %v678_v1 = vld [vmem:[%s785_s3 + $0x8] sm:$0xff]  ;;  %s636_s22 = smov 1   ;;  %631 = vset.pattern.permute.xlu1 %v641_v3  ;;  %632 = vset.pattern.permute.xlu0 %v641_v3  ;;  %v596_v46 = vld [vmem:[%s788_s0 + $0x10] sm:$0xff] }
   0x2   :  { %89 = vrot.lane.b32.xlu1 %v670_v0, %s633_s17  ;;  %25 = vrot.lane.b32.xlu0 %v670_v0, %s634_s18  ;;  %s637_s23 = smov 127   ;;  %s638_s24 = smov 113   ;;  %v19_v4 = vld [vmem:[%s786_s1] sm:$0xff]  ;;  %v696_v8 = vand.u32 127, %v29_v5  ;;  %v592_v33 = vld [vmem:[%s788_s0 + $0x8] sm:$0xff] }
   0x3   :  { %152 = vrot.lane.b32.xlu2 %v670_v0, %s635_s19  ;;  %s639_s3 = smov 112   ;;  %s640_s25 = smov 111   ;;  %v34_v10 = vld [vmem:[%s787_s2] ss:$8 sm:$0x3]  ;;  %v600_v48 = vld [vmem:[%s788_s0 + $0x18] sm:$0xff] }
   0x4   :  { %v591_v11 = vld [vmem:[%s787_s2 + $0x1] ss:$8 sm:$0x3]  ;;  %vm156_vm0 = vcmp.lt.s32.totalorder %v696_v8, 15  ;;  %vm31_vm1 = vcmp.lt.s32.totalorder %v696_v8, 17  ;;  %v36_v12 = vperm.slane %v34_v10, 0 }
   0x5   :  { %v595_v13 = vld [vmem:[%s787_s2 + $0x2] ss:$8 sm:$0x3]  ;;  %v37_v14 = vperm.slane %v34_v10, 1  ;;  %vm93_vm2 = vcmp.lt.s32.totalorder %v696_v8, 16  ;;  %v99_v15 = vperm.slane %v591_v11, 0 }
   0x6   :  { %v100_v16 = vperm.slane %v591_v11, 1  ;;  %v162_v21 = vperm.slane %v595_v13, 0  ;;  %v163_v22 = vperm.slane %v595_v13, 1  ;;  %v42_v31 = vld [vmem:[%s788_s0] sm:$0xff]  ;;  %vm219_vm4 = vcmp.lt.s32.totalorder %v696_v8, 1 }
   0x7   :  { %v599_v32 = vld [vmem:[%s787_s2 + $0x3] ss:$8 sm:$0x3]  ;;  %v610_v45 = vld [vmem:[%s787_s2 + $0x6] ss:$8 sm:$0x3] }
   0x8   :  { %v225_v37 = vperm.slane %v599_v32, 0  ;;  %v226_v38 = vperm.slane %v599_v32, 1  ;;  %v606_v47 = vld [vmem:[%s787_s2 + $0x5] ss:$8 sm:$0x3]  ;;  %vm392_vm5 = vcmp.lt.s32.totalorder %v696_v8, 113 }
   0x9   :  { %v398_v49 = vperm.slane %v610_v45, 0  ;;  %v399_v51 = vperm.slane %v610_v45, 1  ;;  %vm329_vm6 = vcmp.lt.s32.totalorder %v696_v8, 127  ;;  %v335_v52 = vperm.slane %v606_v47, 0 }
   0xa   :  { %91 = vrot.lane.b32.xlu1 %v678_v1, %s633_s17  ;;  %27 = vrot.lane.b32.xlu0 %v678_v1, %s634_s18  ;;  %v336_v53 = vperm.slane %v606_v47, 1  ;;  %v614_v3 = vld [vmem:[%s787_s2 + $0x7] ss:$8 sm:$0x3]  ;;  %vm455_vm7 = vcmp.lt.s32.totalorder %v696_v8, 112  ;;  %vm518_vm8 = vcmp.lt.s32.totalorder %v696_v8, 111 }
   0xb   :  { %154 = vrot.lane.b32.xlu2 %v678_v1, %s635_s19  ;;  %v461_v5 = vperm.slane %v614_v3, 0 }
  0x12   :  { %217 = vrot.lane.b32.xlu1 %v678_v1, %s636_s22  ;;  %215 = vrot.lane.b32.xlu0 %v670_v0, %s636_s22 }
  0x13   :  { %325 = vrot.lane.b32.xlu2 %v670_v0, %s637_s23 }
  0x1a   :  { %388 = vrot.lane.b32.xlu1 %v670_v0, %s638_s24  ;;  %327 = vrot.lane.b32.xlu0 %v678_v1, %s637_s23 }
  0x1b   :  { %390 = vrot.lane.b32.xlu2 %v678_v1, %s638_s24 }
  0x22   :  { %453 = vrot.lane.b32.xlu1 %v678_v1, %s639_s3  ;;  %451 = vrot.lane.b32.xlu0 %v670_v0, %s639_s3 }
  0x23   :  { %514 = vrot.lane.b32.xlu2 %v670_v0, %s640_s25 }
  0x2a   :  { %516 = vrot.lane.b32.xlu0 %v678_v1, %s640_s25  ;;  %22 = vperm.xlu1 %631, %v19_v4   ;;  %v607_v4 = vld [vmem:[%s788_s0 + $0x28] sm:$0xff] }
  0x5d   :  { %v153_v2 = vpop.permute.xlu2 %152 }
  0x65   :  { %v155_v9 = vpop.permute.xlu2 %154 }
  0x66   :  { %v157_v17 = vsel %vm156_vm0, %v153_v2, %v155_v9  ;;  %v158_v18 = vsel %vm156_vm0, %v155_v9, %v153_v2  ;;  %v603_v2 = vld [vmem:[%s788_s0 + $0x20] sm:$0xff] }
  0x67   :  { %v166_v34 = vmul.f32 %v162_v21, %v158_v18  ;;  %v167_v35 = vmul.f32 %v163_v22, %v157_v17 }
  0x6d   :  { %v326_v36 = vpop.permute.xlu2 %325 }
  0x74   :  { %v90_v6 = vpop.permute.xlu1 %89  ;;  %v26_v7 = vpop.permute.xlu0 %25 }
  0x75   :  { %v391_v50 = vpop.permute.xlu2 %390 }
  0x7c   :  { %v92_v19 = vpop.permute.xlu1 %91  ;;  %v28_v20 = vpop.permute.xlu0 %27 }
  0x7d   :  { %v33_v23 = vsel %vm31_vm1, %v28_v20, %v26_v7  ;;  %v32_v24 = vsel %vm31_vm1, %v26_v7, %v28_v20  ;;  %v95_v25 = vsel %vm93_vm2, %v92_v19, %v90_v6  ;;  %v94_v26 = vsel %vm93_vm2, %v90_v6, %v92_v19  ;;  %v515_v17 = vpop.permute.xlu2 %514 }
  0x7e   :  { %v40_v27 = vmul.f32 %v36_v12, %v33_v23  ;;  %v41_v28 = vmul.f32 %v37_v14, %v32_v24  ;;  %v103_v29 = vmul.f32 %v99_v15, %v95_v25  ;;  %v104_v30 = vmul.f32 %v100_v16, %v94_v26  ;;  %v611_v14 = vld [vmem:[%s788_s0 + $0x30] sm:$0xff]  ;;  %v615_v16 = vld [vmem:[%s788_s0 + $0x38] sm:$0xff]  ;;  %v619_v25 = vld [vmem:[%s788_s0 + $0x40] sm:$0xff] }
  0x7f   :  { %v462_v6 = vperm.slane %v614_v3, 1  ;;  %v618_v15 = vld [vmem:[%s787_s2 + $0x10] ss:$8 sm:$0x3] }
  0x80   :  { %62 = vmatpush.msra.mxu0 %v40_v27  ;;  %82 = vmatpush.msra.mxu1 %v41_v28  ;;  %v524_v18 = vperm.slane %v618_v15, 0  ;;  %v525_v19 = vperm.slane %v618_v15, 1 }
  0x81   :  { %125 = vmatpush.msra.mxu2 %v103_v29  ;;  %145 = vmatpush.msra.mxu3 %v104_v30 }
  0x82   :  { %589 = vmatmul.msk.f32.vlgmr.msra.gmra.mxu0 %vm43_vm3, %v42_v31  ;;  %590 = vmatmul.msk.f32.vlgmr.msra.gmra.mxu1 %vm43_vm3, %v42_v31 }
  0x83   :  { %593 = vmatmul.msk.f32.vlgmr.msra.gmra.mxu2 %vm43_vm3, %v592_v33  ;;  %594 = vmatmul.msk.f32.vlgmr.msra.gmra.mxu3 %vm43_vm3, %v592_v33 }
  0x84   :  { %188 = vmatpush.msrb.mxu0 %v166_v34  ;;  %208 = vmatpush.msrb.mxu1 %v167_v35  ;;  %v218_v39 = vpop.permute.xlu1 %217  ;;  %v216_v40 = vpop.permute.xlu0 %215 }
  0x85   :  { %v220_v41 = vsel %vm219_vm4, %v216_v40, %v218_v39  ;;  %v221_v42 = vsel %vm219_vm4, %v218_v39, %v216_v40 }
  0x86   :  { %298 = vmatpush.msra.mxu0 %v670_v0  ;;  %318 = vmatpush.msra.mxu1 %v678_v1  ;;  %v229_v43 = vmul.f32 %v225_v37, %v221_v42  ;;  %v230_v44 = vmul.f32 %v226_v38, %v220_v41 }
  0x88   :  { %251 = vmatpush.msrb.mxu2 %v229_v43  ;;  %271 = vmatpush.msrb.mxu3 %v230_v44 }
  0x8a   :  { %597 = vmatmul.msk.f32.vlgmr.msrb.gmra.mxu0 %vm43_vm3, %v596_v46  ;;  %598 = vmatmul.msk.f32.vlgmr.msrb.gmra.mxu1 %vm43_vm3, %v596_v46 }
  0x8b   :  { %601 = vmatmul.msk.f32.vlgmr.msrb.gmra.mxu2 %vm43_vm3, %v600_v48  ;;  %602 = vmatmul.msk.f32.vlgmr.msrb.gmra.mxu3 %vm43_vm3, %v600_v48 }
  0x8c   :  { %v389_v54 = vpop.permute.xlu1 %388  ;;  %v328_v55 = vpop.permute.xlu0 %327 }
  0x8d   :  { %v393_v56 = vsel %vm392_vm5, %v389_v54, %v391_v50  ;;  %v394_v57 = vsel %vm392_vm5, %v391_v50, %v389_v54  ;;  %v330_v58 = vsel %vm329_vm6, %v326_v36, %v328_v55  ;;  %v331_v59 = vsel %vm329_vm6, %v328_v55, %v326_v36 }
  0x8e   :  { %v402_v60 = vmul.f32 %v398_v49, %v393_v56  ;;  %v403_v61 = vmul.f32 %v399_v51, %v394_v57  ;;  %v339_v62 = vmul.f32 %v335_v52, %v330_v58  ;;  %v340_v63 = vmul.f32 %v336_v53, %v331_v59 }
  0x90   :  { %361 = vmatpush.msra.mxu2 %v339_v62  ;;  %381 = vmatpush.msra.mxu3 %v340_v63 }
  0x91   :  { %424 = vmatpush.msrb.mxu0 %v402_v60  ;;  %444 = vmatpush.msrb.mxu1 %v403_v61 }
  0x92   :  { %604 = vmatmul.msk.f32.vlgmr.msra.gmra.mxu0 %vm43_vm3, %v603_v2  ;;  %605 = vmatmul.msk.f32.vlgmr.msra.gmra.mxu1 %vm43_vm3, %v603_v2 }
  0x93   :  { %608 = vmatmul.msk.f32.vlgmr.msra.gmra.mxu2 %vm43_vm3, %v607_v4  ;;  %609 = vmatmul.msk.f32.vlgmr.msra.gmra.mxu3 %vm43_vm3, %v607_v4 }
  0x94   :  { %v454_v7 = vpop.permute.xlu1 %453  ;;  %v452_v9 = vpop.permute.xlu0 %451 }
  0x95   :  { %v456_v10 = vsel %vm455_vm7, %v452_v9, %v454_v7  ;;  %v457_v11 = vsel %vm455_vm7, %v454_v7, %v452_v9 }
  0x96   :  { %v465_v12 = vmul.f32 %v461_v5, %v456_v10  ;;  %v466_v13 = vmul.f32 %v462_v6, %v457_v11 }
  0x98   :  { %487 = vmatpush.msrb.mxu2 %v465_v12  ;;  %507 = vmatpush.msrb.mxu3 %v466_v13 }
  0x9a   :  { %612 = vmatmul.msk.f32.vlgmr.msrb.gmra.mxu0 %vm43_vm3, %v611_v14  ;;  %613 = vmatmul.msk.f32.vlgmr.msrb.gmra.mxu1 %vm43_vm3, %v611_v14 }
  0x9b   :  { %616 = vmatmul.msk.f32.vlgmr.msrb.gmra.mxu2 %vm43_vm3, %v615_v16  ;;  %617 = vmatmul.msk.f32.vlgmr.msrb.gmra.mxu3 %vm43_vm3, %v615_v16 }
  0x9c   :  { %v517_v20 = vpop.permute.xlu0 %516  ;;  %v23_v31 = vpop.permute.xlu1 %22 }
  0x9d   :  { %v519_v21 = vsel %vm518_vm8, %v515_v17, %v517_v20  ;;  %v520_v22 = vsel %vm518_vm8, %v517_v20, %v515_v17 }
  0x9e   :  { %v528_v23 = vmul.f32 %v524_v18, %v519_v21  ;;  %v529_v24 = vmul.f32 %v525_v19, %v520_v22 }
  0xa0   :  { %550 = vmatpush.msra.mxu0 %v528_v23  ;;  %570 = vmatpush.msra.mxu1 %v529_v24 }
  0xa2   :  { %620 = vmatmul.msk.f32.vlgmr.msra.gmra.mxu0 %vm43_vm3, %v619_v25  ;;  %621 = vmatmul.msk.f32.vlgmr.msra.gmra.mxu1 %vm43_vm3, %v619_v25 }
  0xff   :  { %v64_v8 = vpop.f32.mrf.mxu0  ;;  %v84_v26 = vpop.f32.mrf.mxu1 }
 0x100   :  { %v87_v32 = vadd.f32 %v64_v8, %v23_v31  ;;  %v88_v33 = vadd.f32 %v84_v26, %v23_v31 }
 0x106   :  { %v127_v27 = vpop.f32.mrf.mxu2  ;;  %v147_v28 = vpop.f32.mrf.mxu3 }
 0x107   :  { %v190_v29 = vpop.f32.mrf.mxu0  ;;  %v210_v30 = vpop.f32.mrf.mxu1  ;;  %v150_v34 = vadd.f32 %v127_v27, %v87_v32  ;;  %v151_v35 = vadd.f32 %v147_v28, %v88_v33 }
 0x109   :  { %v213_v40 = vadd.f32 %v190_v29, %v150_v34  ;;  %v214_v41 = vadd.f32 %v210_v30, %v151_v35 }
 0x10e   :  { %v253_v36 = vpop.f32.mrf.mxu2  ;;  %v273_v37 = vpop.f32.mrf.mxu3 }
 0x10f   :  { %v300_v38 = vpop.f32.mrf.mxu0  ;;  %v320_v39 = vpop.f32.mrf.mxu1  ;;  %v276_v42 = vadd.f32 %v253_v36, %v213_v40  ;;  %v277_v43 = vadd.f32 %v273_v37, %v214_v41 }
 0x111   :  { %v323_v46 = vadd.f32 %v300_v38, %v276_v42  ;;  %v324_v47 = vadd.f32 %v320_v39, %v277_v43 }
 0x116   :  { %v363_v44 = vpop.f32.mrf.mxu2  ;;  %v383_v45 = vpop.f32.mrf.mxu3 }
 0x117   :  { %v426_v48 = vpop.f32.mrf.mxu0  ;;  %v446_v49 = vpop.f32.mrf.mxu1  ;;  %v386_v50 = vadd.f32 %v363_v44, %v323_v46  ;;  %v387_v51 = vadd.f32 %v383_v45, %v324_v47 }
 0x119   :  { %v449_v52 = vadd.f32 %v426_v48, %v386_v50  ;;  %v450_v53 = vadd.f32 %v446_v49, %v387_v51 }
 0x11e   :  { %v489_v54 = vpop.f32.mrf.mxu2  ;;  %v509_v55 = vpop.f32.mrf.mxu3 }
 0x11f   :  { %v512_v56 = vadd.f32 %v489_v54, %v449_v52  ;;  %v513_v57 = vadd.f32 %v509_v55, %v450_v53  ;;  %v552_v58 = vpop.f32.mrf.mxu0  ;;  %v572_v59 = vpop.f32.mrf.mxu1 }
 0x121   :  { %v575_v60 = vadd.f32 %v552_v58, %v512_v56  ;;  %v576_v61 = vadd.f32 %v572_v59, %v513_v57 }
 0x123   :  { %v577_v62 = vmul.f32 0.2, %v575_v60  ;;  %v578_v63 = vmul.f32 0.2, %v576_v61 }
 0x125   :  { %v579_v2 = vmax.f32 %v575_v60, %v577_v62  ;;  %v580_v3 = vmax.f32 %v576_v61, %v578_v63 }
 0x127   :  { %v581_v4 = vadd.f32 %v579_v2, %v670_v0  ;;  %v582_v5 = vadd.f32 %v580_v3, %v678_v1 }
 0x129   :  { %583 = vst [vmem:[%s789_s4] sm:$0xff] %v581_v4 }
 0x12a   :  { %584 = vst [vmem:[%s789_s4 + $0x8] sm:$0xff] %v582_v5 }

</bundles_post_ra>
